<compile_context>
chip_gen: v5e
topology: v5e:2x2
jax: 0.10.0
libtpu: 0.0.40
codegen_flags: <defaults>
</compile_context>

<pallas_src>
import jax
import jax.numpy as jnp
from jax.experimental import pallas as pl
from jax.experimental.pallas import tpu as pltpu


def _round_up(a, b):
    return (a + b - 1) // b * b


def mlp_kernel(x_ref, wfc_ref, bfc_ref, wproj_ref, bproj_ref, o_ref, acc_ref):
    # x_ref:     (tm, D)  input row tile (resident across the H axis)
    # wfc_ref:   (D, th)  c_fc weight column-chunk
    # bfc_ref:   (1, th)  c_fc bias chunk
    # wproj_ref: (th, D)  c_proj weight row-chunk
    # bproj_ref: (1, D)   c_proj bias
    # o_ref:     (tm, D)  output tile (written on last H step)
    # acc_ref:   (tm, D)  f32 accumulator scratch
    hi = pl.program_id(1)

    @pl.when(hi == 0)
    def _():
        acc_ref[...] = jnp.zeros_like(acc_ref)

    x = x_ref[...]

    # c_fc partial: (tm, D) @ (D, th) on the MXU, f32 accumulation.
    h = jnp.dot(x, wfc_ref[...], preferred_element_type=jnp.float32)
    h = h + bfc_ref[...].astype(jnp.float32)

    # tanh-approx GELU in f32 (matches nn.GELU(approximate='tanh')).
    # Fused polynomial form: u = h*(c1 + c2*h*h) saves one VALU multiply.
    c1 = 0.7978845608028654          # sqrt(2/pi)
    c2 = c1 * 0.044715
    u = h * (c1 + c2 * h * h)
    g = 0.5 * h * (1.0 + jnp.tanh(u))   # tanh -> EUP slot

    # c_proj partial: (tm, th) @ (th, D), accumulate into f32 scratch.
    acc_ref[...] += jnp.dot(g.astype(x.dtype), wproj_ref[...],
                            preferred_element_type=jnp.float32)

    @pl.when(hi == pl.num_programs(1) - 1)
    def _():
        o_ref[...] = (acc_ref[...]
                      + bproj_ref[...].astype(jnp.float32)).astype(o_ref.dtype)


def mlp_pallas(x, w_fc, b_fc, w_proj, b_proj, *, tm=256, th=512):
    """x: (B, T, D); w_fc: (D, 4D); b_fc: (4D,); w_proj: (4D, D); b_proj: (D,)."""
    B, T, D = x.shape
    H = w_fc.shape[1]
    M = B * T

    # Row tile: multiple of 16 sublanes (valid for f32 and bf16), capped by M.
    tm = min(tm, _round_up(M, 16))
    tm = _round_up(tm, 16)
    Mp = _round_up(M, tm)

    # Hidden tile: multiple of 128 lanes, capped by H; pad H with zeros if
    # needed (zero W_fc cols + zero b_fc -> gelu(0)=0; zero W_proj rows -> 0).
    th = min(th, _round_up(H, 128))
    th = _round_up(th, 128)
    Hp = _round_up(H, th)

    x2 = x.reshape(M, D)
    if Mp != M:
        x2 = jnp.pad(x2, ((0, Mp - M), (0, 0)))

    wfc = w_fc
    bfc = b_fc.reshape(1, H)
    wproj = w_proj
    if Hp != H:
        wfc = jnp.pad(wfc, ((0, 0), (0, Hp - H)))
        bfc = jnp.pad(bfc, ((0, 0), (0, Hp - H)))
        wproj = jnp.pad(wproj, ((0, Hp - H), (0, 0)))
    bproj = b_proj.reshape(1, D)

    itemsize = x.dtype.itemsize
    cost = pl.CostEstimate(
        flops=4 * M * D * H,                       # two M x D x H matmuls
        transcendentals=M * H,                     # one tanh per hidden elem
        bytes_accessed=(x2.size + wfc.size + bfc.size + wproj.size
                        + bproj.size + Mp * D) * itemsize,
    )

    out = pl.pallas_call(
        mlp_kernel,
        out_shape=jax.ShapeDtypeStruct((Mp, D), x.dtype),
        grid_spec=pltpu.PrefetchScalarGridSpec(
            num_scalar_prefetch=0,
            grid=(Mp // tm, Hp // th),
            in_specs=[
                pl.BlockSpec((tm, D), lambda i, h: (i, 0)),   # x rows
                pl.BlockSpec((D, th), lambda i, h: (0, h)),   # W_fc chunk
                pl.BlockSpec((1, th), lambda i, h: (0, h)),   # b_fc chunk
                pl.BlockSpec((th, D), lambda i, h: (h, 0)),   # W_proj chunk
                pl.BlockSpec((1, D), lambda i, h: (0, 0)),    # b_proj
            ],
            out_specs=pl.BlockSpec((tm, D), lambda i, h: (i, 0)),
            scratch_shapes=[pltpu.VMEM((tm, D), jnp.float32)],
        ),
        compiler_params=pltpu.CompilerParams(
            dimension_semantics=("parallel", "arbitrary")),
        cost_estimate=cost,
    )(x2, wfc, bfc, wproj, bproj)

    return out[:M].reshape(B, T, D)


def mlp_reference(x, w_fc, b_fc, w_proj, b_proj):
    h = jnp.dot(x, w_fc) + b_fc
    c = 0.7978845608028654
    h = 0.5 * h * (1.0 + jnp.tanh(c * (h + 0.044715 * h ** 3)))
    return jnp.dot(h, w_proj) + b_proj


if __name__ == "__main__":
    # Small GPT-2-like config: n_embd=32 -> hidden=128
    B, T, D = 2, 8, 32
    H = 4 * D

    key = jax.random.PRNGKey(0)
    k_x, k_wfc, k_bfc, k_wp, k_bp = jax.random.split(key, 5)

    x = jax.random.normal(k_x, (B, T, D), dtype=jnp.float32)
    # Params stored transposed vs torch.nn.Linear (so y = x @ W + b).
    w_fc = jax.random.normal(k_wfc, (D, H), dtype=jnp.float32) * 0.02
    b_fc = jax.random.normal(k_bfc, (H,), dtype=jnp.float32) * 0.02
    w_proj = jax.random.normal(k_wp, (H, D), dtype=jnp.float32) * 0.02
    b_proj = jax.random.normal(k_bp, (D,), dtype=jnp.float32) * 0.02

    ref = mlp_reference(x, w_fc, b_fc, w_proj, b_proj)

    # f32 path (exact vs reference).
    out = jax.block_until_ready(mlp_pallas(x, w_fc, b_fc, w_proj, b_proj))
    assert out.shape == (B, T, D)
    assert jnp.allclose(out, ref, atol=1e-5, rtol=1e-5), "f32 mismatch vs reference"

    # bf16 fast path (MXU-native inputs, f32 accumulation) — looser tolerance.
    out_b = jax.block_until_ready(mlp_pallas(
        x.astype(jnp.bfloat16), w_fc.astype(jnp.bfloat16),
        b_fc.astype(jnp.bfloat16), w_proj.astype(jnp.bfloat16),
        b_proj.astype(jnp.bfloat16)))
    assert jnp.allclose(out_b.astype(jnp.float32), ref, atol=5e-2, rtol=5e-2), \
        "bf16 mismatch vs reference"

    print("KERNEL_OK")
</pallas_src>

<mosaic_0001>
module attributes {stable_mosaic.version = 11 : i64} {
  func.func @mlp_kernel(%arg0: i32, %arg1: i32, %arg2: memref<16x32xf32, #tpu.memory_space<vmem>>, %arg3: memref<32x128xf32, #tpu.memory_space<vmem>>, %arg4: memref<1x128xf32, #tpu.memory_space<vmem>>, %arg5: memref<128x32xf32, #tpu.memory_space<vmem>>, %arg6: memref<1x32xf32, #tpu.memory_space<vmem>>, %arg7: memref<16x32xf32, #tpu.memory_space<vmem>>, %arg8: memref<16x32xf32, #tpu.memory_space<vmem>>) attributes {dimension_semantics = [#tpu.dimension_semantics<parallel>, #tpu.dimension_semantics<arbitrary>], iteration_bounds = array<i64: 1, 1>, scalar_prefetch = 0 : i64, scratch_operands = 1 : i64, tpu.core_type = #tpu.core_type<tc>, window_params = [{transform_indices = @transform_0, window_bounds = array<i64: 16, 32>}, {transform_indices = @transform_1, window_bounds = array<i64: 32, 128>}, {transform_indices = @transform_2, window_bounds = array<i64: 1, 128>}, {transform_indices = @transform_3, window_bounds = array<i64: 128, 32>}, {pipeline_mode = #tpu.pipeline_mode<synchronous>, transform_indices = @transform_4, window_bounds = array<i64: 1, 32>}, {transform_indices = @transform_5, window_bounds = array<i64: 16, 32>}]} {
    %c0_i32 = arith.constant 0 : i32
    %0 = arith.cmpi eq, %arg1, %c0_i32 : i32
    %1 = arith.extui %0 : i1 to i32
    %c0_i32_0 = arith.constant 0 : i32
    %2 = arith.cmpi ne, %1, %c0_i32_0 : i32
    scf.if %2 {
      %cst_19 = arith.constant 0.000000e+00 : f32
      %29 = vector.broadcast %cst_19 : f32 to vector<16x32xf32>
      %c0_20 = arith.constant 0 : index
      %c0_21 = arith.constant 0 : index
      %30 = vector.load %arg8[%c0_20, %c0_21] : memref<16x32xf32, #tpu.memory_space<vmem>>, vector<16x32xf32>
      tpu.vector_store %arg8[%c0_20, %c0_21], %29 {strides = array<i32>} : memref<16x32xf32, #tpu.memory_space<vmem>>, vector<16x32xf32>,
    } else {
    }
    %c0 = arith.constant 0 : index
    %c0_1 = arith.constant 0 : index
    %3 = vector.load %arg2[%c0, %c0_1] : memref<16x32xf32, #tpu.memory_space<vmem>>, vector<16x32xf32>
    %c0_2 = arith.constant 0 : index
    %c0_3 = arith.constant 0 : index
    %4 = vector.load %arg3[%c0_2, %c0_3] : memref<32x128xf32, #tpu.memory_space<vmem>>, vector<32x128xf32>
    %cst = arith.constant dense<0.000000e+00> : vector<16x128xf32>
    %5 = tpu.matmul %3, %4, %cst {dimension_numbers = #tpu.dot_dimension_numbers<[1], [0], [0], [1], [0, 0, 1, 1], [], []>} : vector<16x32xf32>, vector<32x128xf32>, vector<16x128xf32> -> vector<16x128xf32>
    %c0_4 = arith.constant 0 : index
    %c0_5 = arith.constant 0 : index
    %6 = vector.load %arg4[%c0_4, %c0_5] : memref<1x128xf32, #tpu.memory_space<vmem>>, vector<1x128xf32>
    %7 = vector.broadcast %6 : vector<1x128xf32> to vector<16x128xf32>
    %8 = arith.addf %5, %7 : vector<16x128xf32>
    %cst_6 = arith.constant 0.0356774069 : f32
    %9 = vector.broadcast %cst_6 : f32 to vector<16x128xf32>
    %10 = arith.mulf %9, %8 : vector<16x128xf32>
    %11 = arith.mulf %10, %8 : vector<16x128xf32>
    %cst_7 = arith.constant 0.797884583 : f32
    %12 = vector.broadcast %cst_7 : f32 to vector<16x128xf32>
    %13 = arith.addf %12, %11 : vector<16x128xf32>
    %14 = arith.mulf %8, %13 : vector<16x128xf32>
    %cst_8 = arith.constant 5.000000e-01 : f32
    %15 = vector.broadcast %cst_8 : f32 to vector<16x128xf32>
    %16 = arith.mulf %15, %8 : vector<16x128xf32>
    %17 = math.tanh %14 : vector<16x128xf32>
    %cst_9 = arith.constant 1.000000e+00 : f32
    %18 = vector.broadcast %cst_9 : f32 to vector<16x128xf32>
    %19 = arith.addf %18, %17 : vector<16x128xf32>
    %20 = arith.mulf %16, %19 : vector<16x128xf32>
    %c0_10 = arith.constant 0 : index
    %c0_11 = arith.constant 0 : index
    %21 = vector.load %arg8[%c0_10, %c0_11] : memref<16x32xf32, #tpu.memory_space<vmem>>, vector<16x32xf32>
    %c0_12 = arith.constant 0 : index
    %c0_13 = arith.constant 0 : index
    %22 = vector.load %arg5[%c0_12, %c0_13] : memref<128x32xf32, #tpu.memory_space<vmem>>, vector<128x32xf32>
    %cst_14 = arith.constant dense<0.000000e+00> : vector<16x32xf32>
    %23 = tpu.matmul %20, %22, %cst_14 {dimension_numbers = #tpu.dot_dimension_numbers<[1], [0], [0], [1], [0, 0, 1, 1], [], []>} : vector<16x128xf32>, vector<128x32xf32>, vector<16x32xf32> -> vector<16x32xf32>
    %24 = arith.addf %21, %23 : vector<16x32xf32>
    %c0_15 = arith.constant 0 : index
    %c0_16 = arith.constant 0 : index
    %25 = vector.load %arg8[%c0_15, %c0_16] : memref<16x32xf32, #tpu.memory_space<vmem>>, vector<16x32xf32>
    tpu.vector_store %arg8[%c0_15, %c0_16], %24 {strides = array<i32>} : memref<16x32xf32, #tpu.memory_space<vmem>>, vector<16x32xf32>,
    %c0_i32_17 = arith.constant 0 : i32
    %26 = arith.cmpi eq, %arg1, %c0_i32_17 : i32
    %27 = arith.extui %26 : i1 to i32
    %c0_i32_18 = arith.constant 0 : i32
    %28 = arith.cmpi ne, %27, %c0_i32_18 : i32
    scf.if %28 {
      %c0_19 = arith.constant 0 : index
      %c0_20 = arith.constant 0 : index
      %29 = vector.load %arg8[%c0_19, %c0_20] : memref<16x32xf32, #tpu.memory_space<vmem>>, vector<16x32xf32>
      %c0_21 = arith.constant 0 : index
      %c0_22 = arith.constant 0 : index
      %30 = vector.load %arg6[%c0_21, %c0_22] : memref<1x32xf32, #tpu.memory_space<vmem>>, vector<1x32xf32>
      %31 = vector.broadcast %30 : vector<1x32xf32> to vector<16x32xf32>
      %32 = arith.addf %29, %31 : vector<16x32xf32>
      %c0_23 = arith.constant 0 : index
      %c0_24 = arith.constant 0 : index
      %33 = vector.load %arg7[%c0_23, %c0_24] : memref<16x32xf32, #tpu.memory_space<vmem>>, vector<16x32xf32>
      tpu.vector_store %arg7[%c0_23, %c0_24], %32 {strides = array<i32>} : memref<16x32xf32, #tpu.memory_space<vmem>>, vector<16x32xf32>,
    } else {
    }
    return
  }
  func.func @transform_0(%arg0: i32, %arg1: i32) -> (i32, i32) {
    %c0_i32 = arith.constant 0 : i32
    %c0_i32_0 = arith.constant 0 : i32
    return %arg0, %c0_i32 : i32, i32
  }
  func.func @transform_1(%arg0: i32, %arg1: i32) -> (i32, i32) {
    %c0_i32 = arith.constant 0 : i32
    %c0_i32_0 = arith.constant 0 : i32
    return %c0_i32, %arg1 : i32, i32
  }
  func.func @transform_2(%arg0: i32, %arg1: i32) -> (i32, i32) {
    %c0_i32 = arith.constant 0 : i32
    %c0_i32_0 = arith.constant 0 : i32
    return %c0_i32, %arg1 : i32, i32
  }
  func.func @transform_3(%arg0: i32, %arg1: i32) -> (i32, i32) {
    %c0_i32 = arith.constant 0 : i32
    %c0_i32_0 = arith.constant 0 : i32
    return %arg1, %c0_i32 : i32, i32
  }
  func.func @transform_4(%arg0: i32, %arg1: i32) -> (i32, i32) {
    %c0_i32 = arith.constant 0 : i32
    %c0_i32_0 = arith.constant 0 : i32
    %c0_i32_1 = arith.constant 0 : i32
    return %c0_i32, %c0_i32_0 : i32, i32
  }
  func.func @transform_5(%arg0: i32, %arg1: i32) -> (i32, i32) {
    %c0_i32 = arith.constant 0 : i32
    %c0_i32_0 = arith.constant 0 : i32
    return %arg0, %c0_i32 : i32, i32
  }
}

</mosaic_0001>

<bundles_post_ra>
// kernel: tpu_custom_call.1
= control target key start
LH: loop header
LB: loop body
LE: loop exit
PB: predicated region body
PF: predicated region fallthrough
CT: control target
= control target key end

     0   :  { %s331_s0 = inlined_call_operand.vmem [shape: f32[16,32], index: 0, kind: input, shape index: {}]   ;;  %s332_s1 = inlined_call_operand.vmem [shape: f32[32,128], index: 1, kind: input, shape index: {}]   ;;  %s333_s2 = inlined_call_operand.vmem [shape: f32[1,128], index: 2, kind: input, shape index: {}]   ;;  %s334_s3 = inlined_call_operand.vmem [shape: f32[128,32], index: 3, kind: input, shape index: {}]   ;;  %s335_s4 = inlined_call_operand.vmem [shape: f32[1,32], index: 4, kind: input, shape index: {}]   ;;  %s336_s5 = inlined_call_operand.hbm [shape: f32[16,32], index: 5, kind: output, shape index: {}]  }
   0x1   :  { %v33_v0 = vld [vmem:[%s332_s1 + $0x18] sm:$0xff]  ;;  %v32_v1 = vld [vmem:[%s332_s1 + $0x10] sm:$0xff]  ;;  %v31_v2 = vld [vmem:[%s332_s1 + $0x8] sm:$0xff] }
   0x2   :  { %57 = vmatpush.msra.mxu0 %v33_v0  ;;  %v101_v3 = vld [vmem:[%s334_s3 + $0x78] sm:$0xff]  ;;  %v100_v4 = vld [vmem:[%s334_s3 + $0x70] sm:$0xff]  ;;  %v30_v5 = vld [vmem:[%s332_s1] sm:$0xff] }
   0x3   :  { %102 = vmatpush.msra.mxu1 %v101_v3  ;;  %v99_v6 = vld [vmem:[%s334_s3 + $0x68] sm:$0xff]  ;;  %162 = vmatpush.msra.mxu2 %v101_v3 }
   0x4   :  { %58 = vmatpush.msra.mxu0 %v32_v1 }
   0x5   :  { %10 = vsyncpa [#allocation4], 0  ;;  %vm25_vm0 = vcmask 261120   ;;  %v28_v7 = vld [vmem:[%s331_s0] sm:$0xff]  ;;  %103 = vmatpush.msra.mxu1 %v100_v4  ;;  %163 = vmatpush.msra.mxu2 %v100_v4  ;;  %v97_v9 = vld [vmem:[%s334_s3 + $0x58] sm:$0xff]  ;;  %v214_v23 = vmov 0.0  }
   0x6   :  { %59 = vmatpush.msra.mxu0 %v31_v2  ;;  %v98_v8 = vld [vmem:[%s334_s3 + $0x60] sm:$0xff]  ;;  %v29_v10 = vld [vmem:[%s331_s0 + $0x8] sm:$0xff]  ;;  %v96_v11 = vld [vmem:[%s334_s3 + $0x50] sm:$0xff]  ;;  %26 = vst.msk [vmem:[#allocation2] sm:$0xff] %vm25_vm0, %v214_v23  ;;  %s215_s11 = smov [#allocation3]   ;;  %s148_s15 = sshll.u32 %s336_s5, 4  ;;  %s149_s15 = int_to_ptr.hbm [resolvable:$true] %s148_s15 }
   0x7   :  { %104 = vmatpush.msra.mxu1 %v99_v6  ;;  %164 = vmatpush.msra.mxu2 %v99_v6  ;;  %v95_v12 = vld [vmem:[%s334_s3 + $0x48] sm:$0xff]  ;;  %v94_v13 = vld [vmem:[%s334_s3 + $0x40] sm:$0xff]  ;;  %v93_v14 = vld [vmem:[%s334_s3 + $0x38] sm:$0xff]  ;;  %27 = vst.msk [vmem:[#allocation2 + $0x8] sm:$0xff] %vm25_vm0, %v214_v23  ;;  %s146_s12 = sshll.u32 %s215_s11, 4  ;;  %s217_s16 = smov 8   ;;  %s147_s12 = int_to_ptr.vmem [resolvable:$true] %s146_s12 }
   0x8   :  { %60 = vmatpush.msra.mxu0 %v30_v5  ;;  %v92_v15 = vld [vmem:[%s334_s3 + $0x30] sm:$0xff]  ;;  %v91_v16 = vld [vmem:[%s334_s3 + $0x28] sm:$0xff]  ;;  %v90_v17 = vld [vmem:[%s334_s3 + $0x20] sm:$0xff] }
   0x9   :  { %160 = vmatmul.msk.f32.vlgmr.msra.gmra.mxu0 %vm25_vm0, %v28_v7  ;;  %105 = vmatpush.msra.mxu1 %v98_v8  ;;  %v89_v18 = vld [vmem:[%s334_s3 + $0x18] sm:$0xff]  ;;  %v88_v19 = vld [vmem:[%s334_s3 + $0x10] sm:$0xff]  ;;  %v87_v20 = vld [vmem:[%s334_s3 + $0x8] sm:$0xff] }
   0xa   :  { %165 = vmatpush.msra.mxu2 %v98_v8  ;;  %v86_v21 = vld [vmem:[%s334_s3] sm:$0xff] }
   0xb   :  { %106 = vmatpush.msra.mxu1 %v97_v9  ;;  %v182_v22 = vld [vmem:[%s333_s2] ss:$0 sm:$0xff] }
   0xc   :  { %166 = vmatpush.msra.mxu2 %v97_v9  ;;  %v183_v47 = vld [vmem:[%s335_s4] ss:$0 sm:$0xff]  ;;  %s216_s4 = smov 128  }
   0xd   :  { %107 = vmatpush.msra.mxu1 %v96_v11  ;;  %v84_v44 = vld [vmem:[#allocation2] sm:$0xff] }
   0xe   :  { %167 = vmatpush.msra.mxu2 %v96_v11  ;;  %v85_v50 = vld [vmem:[#allocation2 + $0x8] sm:$0xff] }
   0xf   :  { %108 = vmatpush.msra.mxu1 %v95_v12 }
  0x10   :  { %168 = vmatpush.msra.mxu2 %v95_v12 }
  0x11   :  { %161 = vmatmul.msk.f32.gmra.mxu0 %vm25_vm0, %v29_v10  ;;  %109 = vmatpush.msra.mxu1 %v94_v13 }
  0x12   :  { %169 = vmatpush.msra.mxu2 %v94_v13 }
  0x13   :  { %110 = vmatpush.msra.mxu1 %v93_v14 }
  0x14   :  { %170 = vmatpush.msra.mxu2 %v93_v14 }
  0x15   :  { %111 = vmatpush.msra.mxu1 %v92_v15 }
  0x16   :  { %171 = vmatpush.msra.mxu2 %v92_v15 }
  0x17   :  { %112 = vmatpush.msra.mxu1 %v91_v16 }
  0x18   :  { %172 = vmatpush.msra.mxu2 %v91_v16 }
  0x19   :  { %113 = vmatpush.msra.mxu1 %v90_v17 }
  0x1a   :  { %173 = vmatpush.msra.mxu2 %v90_v17 }
  0x1b   :  { %114 = vmatpush.msra.mxu1 %v89_v18 }
  0x1c   :  { %174 = vmatpush.msra.mxu2 %v89_v18 }
  0x1d   :  { %115 = vmatpush.msra.mxu1 %v88_v19 }
  0x1e   :  { %175 = vmatpush.msra.mxu2 %v88_v19 }
  0x1f   :  { %116 = vmatpush.msra.mxu1 %v87_v20 }
  0x20   :  { %176 = vmatpush.msra.mxu2 %v87_v20 }
  0x21   :  { %117 = vmatpush.msra.mxu1 %v86_v21 }
  0x22   :  { %177 = vmatpush.msra.mxu2 %v86_v21 }
  0x86   :  { %v62_v24 = vpop.f32.mrf.mxu0 }
  0x87   :  { %v63_v25 = vadd.f32 %v182_v22, %v62_v24 }
  0x89   :  { %v68_v26 = vmul.f32 0.035677407, %v63_v25  ;;  %v76_v37 = vmul.f32 0.5, %v63_v25 }
  0x8b   :  { %v70_v27 = vmul.f32 %v68_v26, %v63_v25 }
  0x8d   :  { %v72_v28 = vadd.f32 0.7978846, %v70_v27 }
  0x8e   :  { %v65_v29 = vpop.f32.mrf.mxu0 }
  0x8f   :  { %v66_v30 = vadd.f32 %v182_v22, %v65_v29  ;;  %v74_v31 = vmul.f32 %v72_v28, %v63_v25 }
  0x91   :  { %v69_v32 = vmul.f32 0.035677407, %v66_v30  ;;  %184 = vtanh.f32 %v74_v31  ;;  %v77_v41 = vmul.f32 0.5, %v66_v30 }
  0x93   :  { %v71_v33 = vmul.f32 %v69_v32, %v66_v30 }
  0x95   :  { %v73_v34 = vadd.f32 0.7978846, %v71_v33 }
  0x97   :  { %v185_v35 = vpop.eup %184  ;;  %v75_v36 = vmul.f32 %v73_v34, %v66_v30 }
  0x98   :  { %v80_v38 = vadd.f32 1.0, %v185_v35 }
  0x99   :  { %186 = vtanh.f32 %v75_v36 }
  0x9a   :  { %v82_v39 = vmul.f32 %v80_v38, %v76_v37 }
  0x9c   :  { %118 = vmatmul.f32.vlgmr.msra.gmra.mxu1 %v82_v39 }
  0x9f   :  { %v187_v40 = vpop.eup %186 }
  0xa0   :  { %v81_v42 = vadd.f32 1.0, %v187_v40 }
  0xa2   :  { %v83_v43 = vmul.f32 %v81_v42, %v77_v41 }
  0xa4   :  { %121 = vmatmul.f32.vlgmr.msra.gmra.mxu2 %v83_v43 }
 0x119   :  { %v119_v45 = vpop.f32.mrf.mxu1 }
 0x11a   :  { %v125_v46 = vadd.f32 %v119_v45, %v84_v44 }
 0x11c   :  { %127 = vst.msk [vmem:[#allocation2] sm:$0xff] %vm25_vm0, %v125_v46 }
 0x123   :  { %v132_v48 = vld [vmem:[#allocation2] sm:$0xff] }
 0x124   :  { %v138_v49 = vadd.f32 %v183_v47, %v132_v48 }
 0x126   :  { %140 = vst.msk [vmem:[#allocation3] sm:$0xff] %vm25_vm0, %v138_v49 }
 0x127   :  { %v122_v51 = vpop.f32.mrf.mxu2 }
 0x128   :  { %v126_v52 = vadd.f32 %v122_v51, %v85_v50 }
 0x12a   :  { %128 = vst.msk [vmem:[#allocation2 + $0x8] sm:$0xff] %vm25_vm0, %v126_v52 }
 0x131   :  { %v133_v53 = vld [vmem:[#allocation2 + $0x8] sm:$0xff] }
 0x132   :  { %v139_v54 = vadd.f32 %v183_v47, %v133_v53 }
 0x134   :  { %141 = vst.msk [vmem:[#allocation3 + $0x8] sm:$0xff] %vm25_vm0, %v139_v54 }
 0x135   :  { %154 = dma.vmem_to_hbm [thread:$0]  %s147_s12, 256, %s149_s15, [#allocation4], %s216_s4, %s216_s4, %s217_s16  }
 0x136   :  { %212 = dma.done.wait [#allocation4], 256  }
 0x137   :  { %213 = vsyncadd [#allocation4], 4294967040 }
 0x138   :  { %159 = vsyncpa [#allocation4], 1 }

</bundles_post_ra>
